<compile_context>
chip_gen: v7x
topology: tpu7x:2x2x1
jax: 0.10.0
libtpu: 0.0.40
codegen_flags: <defaults>
</compile_context>

<pallas_src>
import jax
import jax.numpy as jnp
from jax.experimental import pallas as pl
from jax.experimental.pallas import tpu as pltpu


def _round_up(x, m):
    return (x + m - 1) // m * m


def _choose_tile_m(m_rows, hp, fp, budget_bytes=40 << 20):
    """Largest row-tile (multiple of 8) whose VMEM footprint fits the budget."""
    # Resident weights: bf16 W1 + W2, f32 biases.
    weight_bytes = 2 * hp * fp * 2 + (hp + fp) * 4
    for tm in (1024, 512, 256, 128, 64, 32, 16, 8):
        # 2x double-buffered f32 input + output tiles, plus (TM, FP) f32 hidden.
        tile_bytes = 2 * 2 * tm * hp * 4 + tm * fp * 4
        if weight_bytes + tile_bytes <= budget_bytes:
            return min(tm, _round_up(m_rows, 8))
    return 8


def _residual_mlp_kernel(x_ref, w1_ref, b1_ref, w2_ref, b2_ref, o_ref):
    # x_ref:  (TM, HP) f32   w1_ref: (HP, FP) bf16   b1_ref: (1, FP) f32
    # w2_ref: (FP, HP) bf16  b2_ref: (1, HP)  f32    o_ref:  (TM, HP) f32
    x = x_ref[...]            # f32 residual, loaded once
    b1 = b1_ref[...]          # hoisted bias broadcasts (read once per tile)
    b2 = b2_ref[...]

    # First matmul: bf16 operands on the MXU, f32 accumulation.
    h = jnp.dot(x.astype(jnp.bfloat16), w1_ref[...],
                preferred_element_type=jnp.float32)
    # Bias + GELU in f32 on VPU/EUP.
    # Note: jax.nn.gelu defaults to the tanh approximation; PyTorch nn.GELU
    # defaults to exact erf. ResidualAdd's wrapped `fn` is unspecified, so the
    # tanh variant is used here (reference below matches it).
    h = jax.nn.gelu(h + b1)

    # Second matmul: explicit bf16 cast so it hits the fast MXU path.
    y = jnp.dot(h.astype(jnp.bfloat16), w2_ref[...],
                preferred_element_type=jnp.float32)

    # ResidualAdd:  out = fn(x) + x  (all in f32, single final cast).
    o_ref[...] = (y + b2 + x).astype(o_ref.dtype)


def residual_add_mlp(x, w1, b1, w2, b2):
    """x: (B, S, H) float32 -> (B, S, H) float32; out = fn(x) + x."""
    B, S, H = x.shape
    F = w1.shape[1]
    M = B * S

    # Lane-dense padding (multiples of 128) and row-tile sizing.
    HP = _round_up(H, 128)
    FP = _round_up(F, 128)
    TM = _choose_tile_m(M, HP, FP)
    MP = _round_up(M, TM)

    # Zero-padded operands. Zeros in the padded columns/rows keep the math
    # exact: GELU(0) == 0, padded weight rows contribute nothing.
    x_pad = jnp.zeros((MP, HP), x.dtype).at[:M, :H].set(x.reshape(M, H))
    w1_p = jnp.zeros((HP, FP), jnp.bfloat16).at[:H, :F].set(
        w1.astype(jnp.bfloat16))
    w2_p = jnp.zeros((FP, HP), jnp.bfloat16).at[:F, :H].set(
        w2.astype(jnp.bfloat16))
    b1_p = jnp.zeros((1, FP), jnp.float32).at[0, :F].set(
        b1.astype(jnp.float32))
    b2_p = jnp.zeros((1, HP), jnp.float32).at[0, :H].set(
        b2.astype(jnp.float32))

    cost = pl.CostEstimate(
        flops=4 * MP * HP * FP,                 # two (MP,HP)x(HP,FP)-class matmuls
        transcendentals=MP * FP,                # GELU
        bytes_accessed=(2 * MP * HP * 4         # x in + out
                        + 2 * HP * FP * 2       # bf16 W1 + W2
                        + (HP + FP) * 4),       # biases
    )

    out_pad = pl.pallas_call(
        _residual_mlp_kernel,
        out_shape=jax.ShapeDtypeStruct((MP, HP), x.dtype),
        grid_spec=pltpu.PrefetchScalarGridSpec(
            num_scalar_prefetch=0,
            grid=(MP // TM,),
            in_specs=[
                pl.BlockSpec((TM, HP), lambda i: (i, 0)),   # x: tiled over rows
                pl.BlockSpec((HP, FP), lambda i: (0, 0)),   # W1: resident
                pl.BlockSpec((1, FP), lambda i: (0, 0)),    # b1: resident
                pl.BlockSpec((FP, HP), lambda i: (0, 0)),   # W2: resident
                pl.BlockSpec((1, HP), lambda i: (0, 0)),    # b2: resident
            ],
            out_specs=pl.BlockSpec((TM, HP), lambda i: (i, 0)),
        ),
        compiler_params=pltpu.CompilerParams(
            dimension_semantics=("parallel",),
            vmem_limit_bytes=48 * 1024 * 1024,
        ),
        cost_estimate=cost,
    )(x_pad, w1_p, b1_p, w2_p, b2_p)

    return out_pad[:M, :H].reshape(B, S, H)


if __name__ == "__main__":
    # Small shapes: batch=2, seq=8, hidden=32, ffn expansion = 2
    B, S, H = 2, 8, 32
    F = 2 * H

    key = jax.random.PRNGKey(0)
    kx, kw1, kb1, kw2, kb2 = jax.random.split(key, 5)

    x = jax.random.normal(kx, (B, S, H), dtype=jnp.float32)
    w1 = jax.random.normal(kw1, (H, F), dtype=jnp.float32) * 0.05
    b1 = jax.random.normal(kb1, (F,), dtype=jnp.float32) * 0.01
    w2 = jax.random.normal(kw2, (F, H), dtype=jnp.float32) * 0.05
    b2 = jax.random.normal(kb2, (B and F, H)[1:], dtype=jnp.float32) * 0.01  # (H,)

    out = residual_add_mlp(x, w1, b1, w2, b2)
    jax.block_until_ready(out)
    assert out.shape == x.shape and out.dtype == x.dtype

    # Reference 1: same bf16-matmul / f32-accumulate recipe -> tight tolerance.
    x2d = x.reshape(-1, H)
    h_ref = jnp.dot(x2d.astype(jnp.bfloat16), w1.astype(jnp.bfloat16),
                    preferred_element_type=jnp.float32) + b1
    h_ref = jax.nn.gelu(h_ref)
    y_ref = jnp.dot(h_ref.astype(jnp.bfloat16), w2.astype(jnp.bfloat16),
                    preferred_element_type=jnp.float32) + b2
    ref_bf16 = (y_ref + x2d).reshape(B, S, H)
    assert jnp.allclose(out, ref_bf16, atol=1e-4, rtol=1e-4)

    # Reference 2: pure f32 reference -> loose sanity check (bf16 matmul error).
    ref_f32 = x + (jax.nn.gelu(x @ w1 + b1) @ w2 + b2)
    assert jnp.allclose(out, ref_f32, atol=1e-2, rtol=1e-2)

    print("KERNEL_OK")
</pallas_src>

<mosaic_0001>
module attributes {stable_mosaic.version = 11 : i64} {
  func.func @_residual_mlp_kernel(%arg0: i32, %arg1: memref<16x128xf32, #tpu.memory_space<vmem>>, %arg2: memref<128x128xbf16, #tpu.memory_space<vmem>>, %arg3: memref<1x128xf32, #tpu.memory_space<vmem>>, %arg4: memref<128x128xbf16, #tpu.memory_space<vmem>>, %arg5: memref<1x128xf32, #tpu.memory_space<vmem>>, %arg6: memref<16x128xf32, #tpu.memory_space<vmem>>) attributes {dimension_semantics = [#tpu.dimension_semantics<parallel>], iteration_bounds = array<i64: 1>, scalar_prefetch = 0 : i64, scratch_operands = 0 : i64, tpu.core_type = #tpu.core_type<tc>, window_params = [{transform_indices = @transform_0, window_bounds = array<i64: 16, 128>}, {pipeline_mode = #tpu.pipeline_mode<synchronous>, transform_indices = @transform_1, window_bounds = array<i64: 128, 128>}, {pipeline_mode = #tpu.pipeline_mode<synchronous>, transform_indices = @transform_2, window_bounds = array<i64: 1, 128>}, {pipeline_mode = #tpu.pipeline_mode<synchronous>, transform_indices = @transform_3, window_bounds = array<i64: 128, 128>}, {pipeline_mode = #tpu.pipeline_mode<synchronous>, transform_indices = @transform_4, window_bounds = array<i64: 1, 128>}, {transform_indices = @transform_5, window_bounds = array<i64: 16, 128>}]} {
    %c0 = arith.constant 0 : index
    %c0_0 = arith.constant 0 : index
    %0 = vector.load %arg1[%c0, %c0_0] : memref<16x128xf32, #tpu.memory_space<vmem>>, vector<16x128xf32>
    %c0_1 = arith.constant 0 : index
    %c0_2 = arith.constant 0 : index
    %1 = vector.load %arg3[%c0_1, %c0_2] : memref<1x128xf32, #tpu.memory_space<vmem>>, vector<1x128xf32>
    %c0_3 = arith.constant 0 : index
    %c0_4 = arith.constant 0 : index
    %2 = vector.load %arg5[%c0_3, %c0_4] : memref<1x128xf32, #tpu.memory_space<vmem>>, vector<1x128xf32>
    %3 = arith.truncf %0 : vector<16x128xf32> to vector<16x128xbf16>
    %c0_5 = arith.constant 0 : index
    %c0_6 = arith.constant 0 : index
    %4 = vector.load %arg2[%c0_5, %c0_6] : memref<128x128xbf16, #tpu.memory_space<vmem>>, vector<128x128xbf16>
    %cst = arith.constant dense<0.000000e+00> : vector<16x128xf32>
    %5 = tpu.matmul %3, %4, %cst {dimension_numbers = #tpu.dot_dimension_numbers<[1], [0], [0], [1], [0, 0, 1, 1], [], []>} : vector<16x128xbf16>, vector<128x128xbf16>, vector<16x128xf32> -> vector<16x128xf32>
    %6 = vector.broadcast %1 : vector<1x128xf32> to vector<16x128xf32>
    %7 = arith.addf %5, %6 : vector<16x128xf32>
    %8 = arith.mulf %7, %7 : vector<16x128xf32>
    %9 = arith.mulf %7, %8 : vector<16x128xf32>
    %cst_7 = arith.constant 4.471500e-02 : f32
    %10 = vector.broadcast %cst_7 : f32 to vector<16x128xf32>
    %11 = arith.mulf %10, %9 : vector<16x128xf32>
    %12 = arith.addf %7, %11 : vector<16x128xf32>
    %cst_8 = arith.constant 0.797884583 : f32
    %13 = vector.broadcast %cst_8 : f32 to vector<16x128xf32>
    %14 = arith.mulf %13, %12 : vector<16x128xf32>
    %15 = math.tanh %14 : vector<16x128xf32>
    %cst_9 = arith.constant 1.000000e+00 : f32
    %16 = vector.broadcast %cst_9 : f32 to vector<16x128xf32>
    %17 = arith.addf %16, %15 : vector<16x128xf32>
    %cst_10 = arith.constant 5.000000e-01 : f32
    %18 = vector.broadcast %cst_10 : f32 to vector<16x128xf32>
    %19 = arith.mulf %18, %17 : vector<16x128xf32>
    %20 = arith.mulf %7, %19 : vector<16x128xf32>
    %21 = arith.truncf %20 : vector<16x128xf32> to vector<16x128xbf16>
    %c0_11 = arith.constant 0 : index
    %c0_12 = arith.constant 0 : index
    %22 = vector.load %arg4[%c0_11, %c0_12] : memref<128x128xbf16, #tpu.memory_space<vmem>>, vector<128x128xbf16>
    %cst_13 = arith.constant dense<0.000000e+00> : vector<16x128xf32>
    %23 = tpu.matmul %21, %22, %cst_13 {dimension_numbers = #tpu.dot_dimension_numbers<[1], [0], [0], [1], [0, 0, 1, 1], [], []>} : vector<16x128xbf16>, vector<128x128xbf16>, vector<16x128xf32> -> vector<16x128xf32>
    %24 = vector.broadcast %2 : vector<1x128xf32> to vector<16x128xf32>
    %25 = arith.addf %23, %24 : vector<16x128xf32>
    %26 = arith.addf %25, %0 : vector<16x128xf32>
    %c0_14 = arith.constant 0 : index
    %c0_15 = arith.constant 0 : index
    %27 = vector.load %arg6[%c0_14, %c0_15] : memref<16x128xf32, #tpu.memory_space<vmem>>, vector<16x128xf32>
    tpu.vector_store %arg6[%c0_14, %c0_15], %26 {strides = array<i32>} : memref<16x128xf32, #tpu.memory_space<vmem>>, vector<16x128xf32>,
    return
  }
  func.func @transform_0(%arg0: i32) -> (i32, i32) {
    %c0_i32 = arith.constant 0 : i32
    %c0_i32_0 = arith.constant 0 : i32
    return %arg0, %c0_i32 : i32, i32
  }
  func.func @transform_1(%arg0: i32) -> (i32, i32) {
    %c0_i32 = arith.constant 0 : i32
    %c0_i32_0 = arith.constant 0 : i32
    %c0_i32_1 = arith.constant 0 : i32
    return %c0_i32, %c0_i32_0 : i32, i32
  }
  func.func @transform_2(%arg0: i32) -> (i32, i32) {
    %c0_i32 = arith.constant 0 : i32
    %c0_i32_0 = arith.constant 0 : i32
    %c0_i32_1 = arith.constant 0 : i32
    return %c0_i32, %c0_i32_0 : i32, i32
  }
  func.func @transform_3(%arg0: i32) -> (i32, i32) {
    %c0_i32 = arith.constant 0 : i32
    %c0_i32_0 = arith.constant 0 : i32
    %c0_i32_1 = arith.constant 0 : i32
    return %c0_i32, %c0_i32_0 : i32, i32
  }
  func.func @transform_4(%arg0: i32) -> (i32, i32) {
    %c0_i32 = arith.constant 0 : i32
    %c0_i32_0 = arith.constant 0 : i32
    %c0_i32_1 = arith.constant 0 : i32
    return %c0_i32, %c0_i32_0 : i32, i32
  }
  func.func @transform_5(%arg0: i32) -> (i32, i32) {
    %c0_i32 = arith.constant 0 : i32
    %c0_i32_0 = arith.constant 0 : i32
    return %arg0, %c0_i32 : i32, i32
  }
}

</mosaic_0001>

<bundles_post_ra>
// kernel: tpu_custom_call.1
= control target key start
LH: loop header
LB: loop body
LE: loop exit
PB: predicated region body
PF: predicated region fallthrough
CT: control target
= control target key end

     0   :  { %10 = vsyncpa [#allocation3], 0  ;;  %s645_s0 = inlined_call_operand.hbm [shape: f32[16,128], index: 0, kind: input, shape index: {}]   ;;  %s646_s1 = inlined_call_operand.hbm [shape: bf16[128,128], index: 1, kind: input, shape index: {}]   ;;  %s647_s2 = inlined_call_operand.vmem [shape: f32[1,128], index: 2, kind: input, shape index: {}]   ;;  %s648_s3 = inlined_call_operand.hbm [shape: bf16[128,128], index: 3, kind: input, shape index: {}]   ;;  %s649_s4 = inlined_call_operand.vmem [shape: f32[1,128], index: 4, kind: input, shape index: {}]   ;;  %s650_s5 = inlined_call_operand.hbm [shape: f32[16,128], index: 5, kind: output, shape index: {}]  }
   0x1   :  { %11 = vsyncpa [#allocation6], 0 }
   0x2   :  { %12 = vsyncpa [#allocation4], 0  ;;  %s531_s18 = smov [#allocation5]   ;;  %s437_s22 = scalar_lea.hbm %s646_s1, 1024 }
   0x3   :  { %s30_s19 = sshll.u32 %s531_s18, 4  ;;  %p438_p0 = scmp.ne.s32.totalorder %s646_s1, %s437_s22  ;;  %s31_s19 = int_to_ptr.vmem [resolvable:$true] %s30_s19 }
   0x4   :  { %p441_p1 = scmp.lt.u32.totalorder %s437_s22, %s646_s1 }
   0x6   :  { %p443_p2 = pnand %p441_p1, %p438_p0 }
   0x8   :  { %446 = shalt.err (!%p443_p2)
}
   0x9   :  { %s447_s27 = scalar_lea.vmem %s31_s19, 1024  ;;  %p452_p4 = scmp.lt.s32.totalorder %s31_s19, %s31_s19 }
   0xa   :  { %p448_p3 = scmp.ne.s32.totalorder %s31_s19, %s447_s27  ;;  %p453_p5 = scmp.lt.s32.totalorder %s447_s27, %s447_s27 }
   0xc   :  { %p454_p6 = por %p453_p5, %p452_p4 }
   0xe   :  { %p455_p7 = pnand %p454_p6, %p448_p3 }
  0x10   :  { %458 = shalt.err (!%p455_p7)
}
  0x11   :  { %s532_s28 = smov 64   ;;  %s533_s29 = smov 4  }
  0x12   :  { %36 = dma.hbm_to_vmem [thread:$0]  %s646_s1, 1024, %s31_s19, [#allocation6], %s532_s28, %s532_s28, %s533_s29  }
  0x13   :  { %s534_s7 = smov [#allocation2]   ;;  %s459_s11 = scalar_lea.hbm %s645_s0, 256 }
  0x14   :  { %s18_s8 = sshll.u32 %s534_s7, 4  ;;  %p460_p8 = scmp.ne.s32.totalorder %s645_s0, %s459_s11  ;;  %s19_s8 = int_to_ptr.vmem [resolvable:$true] %s18_s8 }
  0x15   :  { %p463_p9 = scmp.lt.u32.totalorder %s459_s11, %s645_s0 }
  0x17   :  { %p465_p10 = pnand %p463_p9, %p460_p8 }
  0x19   :  { %468 = shalt.err (!%p465_p10)
}
  0x1a   :  { %s469_s16 = scalar_lea.vmem %s19_s8, 256  ;;  %p474_p12 = scmp.lt.s32.totalorder %s19_s8, %s19_s8 }
  0x1b   :  { %p470_p11 = scmp.ne.s32.totalorder %s19_s8, %s469_s16  ;;  %p475_p13 = scmp.lt.s32.totalorder %s469_s16, %s469_s16 }
  0x1d   :  { %p476_p0 = por %p475_p13, %p474_p12 }
  0x1f   :  { %p477_p1 = pnand %p476_p0, %p470_p11 }
  0x21   :  { %480 = shalt.err (!%p477_p1)
}
  0x22   :  { %s535_s1 = smov 128   ;;  %s536_s17 = smov 8  }
  0x23   :  { %24 = dma.hbm_to_vmem [thread:$0]  %s645_s0, 256, %s19_s8, [#allocation3], %s535_s1, %s535_s1, %s536_s17  }
  0x24   :  { %s537_s20 = smov [#allocation7]   ;;  %s481_s24 = scalar_lea.hbm %s648_s3, 1024 }
  0x25   :  { %s44_s21 = sshll.u32 %s537_s20, 4  ;;  %p482_p2 = scmp.ne.s32.totalorder %s648_s3, %s481_s24  ;;  %s45_s21 = int_to_ptr.vmem [resolvable:$true] %s44_s21 }
  0x26   :  { %p485_p3 = scmp.lt.u32.totalorder %s481_s24, %s648_s3 }
  0x28   :  { %p487_p4 = pnand %p485_p3, %p482_p2 }
  0x2a   :  { %490 = shalt.err (!%p487_p4)
}
  0x2b   :  { %s491_s6 = scalar_lea.vmem %s45_s21, 1024  ;;  %p496_p6 = scmp.lt.s32.totalorder %s45_s21, %s45_s21 }
  0x2c   :  { %p492_p5 = scmp.ne.s32.totalorder %s45_s21, %s491_s6  ;;  %p497_p7 = scmp.lt.s32.totalorder %s491_s6, %s491_s6 }
  0x2e   :  { %p498_p8 = por %p497_p7, %p496_p6 }
  0x30   :  { %p499_p9 = pnand %p498_p8, %p492_p5 }
  0x32   :  { %502 = shalt.err (!%p499_p9)
}
  0x33   :  { %50 = dma.hbm_to_vmem [thread:$0]  %s648_s3, 1024, %s45_s21, [#allocation6], %s532_s28, %s532_s28, %s533_s29  }
  0x34   :  { %525 = dma.done.wait [#allocation3], 256  }
  0x35   :  { %526 = vsyncadd [#allocation3], 4294967040 }
  0x36   :  { %527 = dma.done.wait [#allocation6], 2048  }
  0x37   :  { %528 = vsyncadd [#allocation6], 4294965248  ;;  %v538_v0 = vmov 0.0   ;;  %vm539_vm0 = vmmov 0   ;;  %v417_v1 = vld [vmem:[#allocation5] sm:$0xff]   ;;  %v418_v2 = vld [vmem:[#allocation5 + $0x8] sm:$0xff]  }
  0x38   :  { %367 = vmatprep.subr.bf16.mxu0 %v538_v0  ;;  %383 = vmatprep.mubr.msk.bf16.mxu0 %vm539_vm0, %v538_v0  ;;  %v419_v3 = vld [vmem:[#allocation5 + $0x10] sm:$0xff]   ;;  %v420_v4 = vld [vmem:[#allocation5 + $0x18] sm:$0xff]   ;;  %v421_v5 = vld [vmem:[#allocation5 + $0x20] sm:$0xff]   ;;  %s540_s8 = smov [#allocation8]  }
  0x39   :  { %387 = vmatprep.subr.bf16.mxu1 %v538_v0  ;;  %403 = vmatprep.mubr.msk.bf16.mxu1 %vm539_vm0, %v538_v0  ;;  %v422_v6 = vld [vmem:[#allocation5 + $0x28] sm:$0xff]   ;;  %v423_v7 = vld [vmem:[#allocation5 + $0x30] sm:$0xff]   ;;  %v424_v8 = vld [vmem:[#allocation5 + $0x38] sm:$0xff]   ;;  %s318_s9 = sshll.u32 %s540_s8, 4  ;;  %s319_s9 = int_to_ptr.vmem [resolvable:$true] %s318_s9 }
  0x3a   :  { %368 = vmatpush3.bf16.msra.mxu0 %v417_v1  ;;  %v616_v9 = vld [vmem:[#allocation2] sm:$0xff]  ;;  %v618_v10 = vld [vmem:[#allocation2 + $0x8] sm:$0xff]  ;;  %v425_v12 = vld [vmem:[#allocation7] sm:$0xff]   ;;  %s503_s10 = scalar_lea.vmem %s319_s9, 256  ;;  %p508_p11 = scmp.lt.s32.totalorder %s319_s9, %s319_s9 }
  0x3b   :  { %369 = vmatprep.subr.bf16.mxu0 %v538_v0  ;;  %v67_v11 = vpack.c.bf16 %v618_v10, %v616_v9  ;;  %388 = vmatpush3.bf16.msra.mxu1 %v425_v12  ;;  %v426_v13 = vld [vmem:[#allocation7 + $0x8] sm:$0xff]   ;;  %v427_v14 = vld [vmem:[#allocation7 + $0x10] sm:$0xff]   ;;  %v428_v15 = vld [vmem:[#allocation7 + $0x18] sm:$0xff]   ;;  %p504_p10 = scmp.ne.s32.totalorder %s319_s9, %s503_s10  ;;  %p509_p12 = scmp.lt.s32.totalorder %s503_s10, %s503_s10 }
  0x3c   :  { %389 = vmatprep.subr.bf16.mxu1 %v538_v0  ;;  %v429_v16 = vld [vmem:[#allocation7 + $0x20] sm:$0xff]   ;;  %v430_v17 = vld [vmem:[#allocation7 + $0x28] sm:$0xff]   ;;  %v431_v18 = vld [vmem:[#allocation7 + $0x30] sm:$0xff]  }
  0x3d   :  { %v432_v19 = vld [vmem:[#allocation7 + $0x38] sm:$0xff]   ;;  %v331_v20 = vld [vmem:[%s647_s2] ss:$0 sm:$0xff]  ;;  %p510_p13 = por %p509_p12, %p508_p11 }
  0x3e   :  { %370 = vmatpush3.bf16.msra.mxu0 %v418_v2  ;;  %v340_v46 = vld [vmem:[%s649_s4] ss:$0 sm:$0xff] }
  0x3f   :  { %371 = vmatprep.subr.bf16.mxu0 %v538_v0  ;;  %390 = vmatpush3.bf16.msra.mxu1 %v426_v13  ;;  %p511_p0 = pnand %p510_p13, %p504_p10 }
  0x40   :  { %391 = vmatprep.subr.bf16.mxu1 %v538_v0 }
  0x42   :  { %372 = vmatpush3.bf16.msra.mxu0 %v419_v3 }
  0x43   :  { %373 = vmatprep.subr.bf16.mxu0 %v538_v0  ;;  %392 = vmatpush3.bf16.msra.mxu1 %v427_v14 }
  0x44   :  { %393 = vmatprep.subr.bf16.mxu1 %v538_v0 }
  0x46   :  { %374 = vmatpush3.bf16.msra.mxu0 %v420_v4 }
  0x47   :  { %375 = vmatprep.subr.bf16.mxu0 %v538_v0  ;;  %394 = vmatpush3.bf16.msra.mxu1 %v428_v15 }
  0x48   :  { %395 = vmatprep.subr.bf16.mxu1 %v538_v0 }
  0x4a   :  { %376 = vmatpush3.bf16.msra.mxu0 %v421_v5 }
  0x4b   :  { %377 = vmatprep.subr.bf16.mxu0 %v538_v0  ;;  %396 = vmatpush3.bf16.msra.mxu1 %v429_v16 }
  0x4c   :  { %397 = vmatprep.subr.bf16.mxu1 %v538_v0 }
  0x4e   :  { %378 = vmatpush3.bf16.msra.mxu0 %v422_v6 }
  0x4f   :  { %379 = vmatprep.subr.bf16.mxu0 %v538_v0  ;;  %398 = vmatpush3.bf16.msra.mxu1 %v430_v17 }
  0x50   :  { %399 = vmatprep.subr.bf16.mxu1 %v538_v0 }
  0x52   :  { %380 = vmatpush3.bf16.msra.mxu0 %v423_v7 }
  0x53   :  { %381 = vmatprep.subr.bf16.mxu0 %v538_v0  ;;  %400 = vmatpush3.bf16.msra.mxu1 %v431_v18 }
  0x54   :  { %401 = vmatprep.subr.bf16.mxu1 %v538_v0 }
  0x56   :  { %382 = vmatpush3.bf16.msra.mxu0 %v424_v8 }
  0x57   :  { %402 = vmatpush3.bf16.msra.mxu1 %v432_v19 }
  0x59   :  { %384 = vmatmul.mubr.bf16.vlgmr.msra.gmra.mrb[0].mxu0 %v67_v11 }
 0x12c   :  { %v172_v21 = vpop.f32.mrb[0].mxu0 }
 0x12d   :  { %v173_v22 = vadd.f32 %v331_v20, %v172_v21  ;;  %v385_v23 = vpop.f32.mrb[1].mxu0 }
 0x12e   :  { %v175_v24 = vpop.f32.mrb[2].mxu0 }
 0x12f   :  { %v179_v25 = vmul.f32 %v173_v22, %v173_v22  ;;  %v176_v26 = vadd.f32 %v331_v20, %v175_v24  ;;  %v386_v27 = vpop.f32.mrb[3].mxu0 }
 0x131   :  { %v181_v28 = vmul.f32 %v179_v25, %v173_v22  ;;  %v180_v29 = vmul.f32 %v176_v26, %v176_v26 }
 0x133   :  { %v183_v30 = vmul.f32 0.044715, %v181_v28  ;;  %v182_v31 = vmul.f32 %v180_v29, %v176_v26 }
 0x135   :  { %v185_v32 = vadd.f32 %v183_v30, %v173_v22  ;;  %v184_v33 = vmul.f32 0.044715, %v182_v31 }
 0x137   :  { %v187_v34 = vmul.f32 0.7978846, %v185_v32  ;;  %v186_v35 = vadd.f32 %v184_v33, %v176_v26 }
 0x139   :  { %433 = vtanh.f32 %v187_v34  ;;  %v188_v36 = vmul.f32 0.7978846, %v186_v35 }
 0x13b   :  { %435 = vtanh.f32 %v188_v36 }
 0x143   :  { %v434_v37 = vpop.eup %433 }
 0x144   :  { %v191_v38 = vadd.f32 1.0, %v434_v37 }
 0x145   :  { %v436_v39 = vpop.eup %435 }
 0x146   :  { %v192_v40 = vadd.f32 1.0, %v436_v39  ;;  %v193_v41 = vmul.f32 0.5, %v191_v38 }
 0x148   :  { %v194_v42 = vmul.f32 0.5, %v192_v40  ;;  %v195_v43 = vmul.f32 %v193_v41, %v173_v22 }
 0x14a   :  { %v196_v44 = vmul.f32 %v194_v42, %v176_v26 }
 0x14c   :  { %v197_v45 = vpack.c.bf16 %v196_v44, %v195_v43 }
 0x14e   :  { %404 = vmatmul.mubr.bf16.vlgmr.msra.gmra.mrb[0].mxu1 %v197_v45 }
 0x221   :  { %v302_v47 = vpop.f32.mrb[0].mxu1 }
 0x222   :  { %v303_v48 = vadd.f32 %v340_v46, %v302_v47  ;;  %v405_v49 = vpop.f32.mrb[1].mxu1 }
 0x223   :  { %v305_v50 = vpop.f32.mrb[2].mxu1 }
 0x224   :  { %v309_v51 = vadd.f32 %v303_v48, %v616_v9  ;;  %v306_v52 = vadd.f32 %v340_v46, %v305_v50  ;;  %v406_v53 = vpop.f32.mrb[3].mxu1 }
 0x226   :  { %311 = vst [vmem:[#allocation8] sm:$0xff] %v309_v51  ;;  %v310_v54 = vadd.f32 %v306_v52, %v618_v10 }
 0x228   :  { %312 = vst [vmem:[#allocation8 + $0x8] sm:$0xff] %v310_v54 }
 0x229   :  { %514 = shalt.err (!%p511_p0)
}
 0x22a   :  { %s515_s12 = scalar_lea.hbm %s650_s5, 256 }
 0x22b   :  { %p516_p1 = scmp.ne.s32.totalorder %s650_s5, %s515_s12  ;;  %p519_p2 = scmp.lt.u32.totalorder %s515_s12, %s650_s5 }
 0x22d   :  { %p521_p3 = pnand %p519_p2, %p516_p1 }
 0x22f   :  { %524 = shalt.err (!%p521_p3)
}
 0x230   :  { %324 = dma.vmem_to_hbm [thread:$0]  %s319_s9, 256, %s650_s5, [#allocation4], %s535_s1, %s535_s1, %s536_s17  }
 0x231   :  { %529 = dma.done.wait [#allocation4], 256  }
 0x232   :  { %530 = vsyncadd [#allocation4], 4294967040 }
 0x233   :  { %328 = vsyncpa [#allocation3], 1 }
 0x234   :  { %329 = vsyncpa [#allocation6], 1 }
 0x235   :  { %330 = vsyncpa [#allocation4], 1 }

</bundles_post_ra>
